<compile_context>
chip_gen: v7x
topology: tpu7x:2x2x1
jax: 0.10.0
libtpu: 0.0.40
codegen_flags: <defaults>
</compile_context>

<pallas_src>
import functools

import jax
import jax.numpy as jnp
from jax import lax
from jax.experimental import pallas as pl
from jax.experimental.pallas import tpu as pltpu

_INV_SQRT2 = 0.7071067811865476
_LN_EPS = 1e-12


def _round_up(x, m):
    return ((x + m - 1) // m) * m


def _image_pred_head_kernel(x_ref, wt_ref, bt_ref, g_ref, beta_ref,
                            wd_ref, bd_ref, o_ref):
    """One row tile: out = LayerNorm(gelu(x @ Wt + bt)) @ Wd + bd."""
    # Transform dense: native-dtype operands, f32 accumulation on the MXU.
    h = jnp.dot(x_ref[...], wt_ref[...], preferred_element_type=jnp.float32)
    h = h + bt_ref[...].astype(jnp.float32)

    # Exact (erf) GELU, as in BERT/ViLBERT.
    h = 0.5 * h * (1.0 + lax.erf(h * _INV_SQRT2))

    # BertLayerNorm (eps=1e-12), f32 math over the hidden axis.
    mean = jnp.mean(h, axis=-1, keepdims=True)
    cen = h - mean
    var = jnp.mean(cen * cen, axis=-1, keepdims=True)
    h = cen * lax.rsqrt(var + _LN_EPS)
    h = h * g_ref[...].astype(jnp.float32) + beta_ref[...].astype(jnp.float32)

    # Decoder dense: cast activations down to the weight dtype (e.g. bf16) so
    # the MXU runs at full rate; accumulate in f32.
    out = jnp.dot(h.astype(wd_ref.dtype), wd_ref[...],
                  preferred_element_type=jnp.float32)
    out = out + bd_ref[...].astype(jnp.float32)
    o_ref[...] = out.astype(o_ref.dtype)


def bert_image_prediction_head(params, hidden_states, *, row_tile=256):
    """Pallas implementation of BertImagePredictionHead.forward (inference).

    params:
      w_t, b_t   : transform dense, shapes [H, H], [H]
      ln_g, ln_b : LayerNorm gamma/beta, shape [H]
      w_d, b_d   : decoder dense, shapes [H, T], [T]
    hidden_states: [..., H]  ->  returns [..., T]
    """
    lead = hidden_states.shape[:-1]
    H = hidden_states.shape[-1]
    T = params["w_d"].shape[1]

    x = hidden_states.reshape(-1, H)
    M = x.shape[0]

    # Row tile: fill the MXU (256-aligned for v6e/v7x) but clamp for tiny M;
    # pad rows to a whole number of tiles instead of asserting divisibility.
    rt = min(row_tile, _round_up(M, 8))
    M_pad = _round_up(M, rt)
    if M_pad != M:
        x = jnp.pad(x, ((0, M_pad - M), (0, 0)))

    # Lane-dense output: pad decoder columns (and bias) to a multiple of 128.
    T_pad = _round_up(T, 128)
    w_d = params["w_d"]
    b_d = params["b_d"]
    if T_pad != T:
        w_d = jnp.pad(w_d, ((0, 0), (0, T_pad - T)))
        b_d = jnp.pad(b_d, ((0, T_pad - T),))

    b_t = params["b_t"].reshape(1, H)
    gamma = params["ln_g"].reshape(1, H)
    beta = params["ln_b"].reshape(1, H)
    b_d2 = b_d.reshape(1, T_pad)

    grid = (M_pad // rt,)
    out = pl.pallas_call(
        _image_pred_head_kernel,
        out_shape=jax.ShapeDtypeStruct((M_pad, T_pad), hidden_states.dtype),
        grid_spec=pltpu.PrefetchScalarGridSpec(
            num_scalar_prefetch=0,
            grid=grid,
            in_specs=[
                pl.BlockSpec((rt, H), lambda i: (i, 0)),      # x row tile
                pl.BlockSpec((H, H), lambda i: (0, 0)),       # W_t (resident)
                pl.BlockSpec((1, H), lambda i: (0, 0)),       # b_t
                pl.BlockSpec((1, H), lambda i: (0, 0)),       # gamma
                pl.BlockSpec((1, H), lambda i: (0, 0)),       # beta
                pl.BlockSpec((H, T_pad), lambda i: (0, 0)),   # W_d (resident)
                pl.BlockSpec((1, T_pad), lambda i: (0, 0)),   # b_d
            ],
            out_specs=pl.BlockSpec((rt, T_pad), lambda i: (i, 0)),
        ),
        compiler_params=pltpu.CompilerParams(
            dimension_semantics=("parallel",),
            vmem_limit_bytes=48 * 1024 * 1024,
        ),
    )(x, params["w_t"], b_t, gamma, beta, w_d, b_d2)

    return out[:M, :T].reshape(*lead, T)


def _reference(params, hidden_states):
    """Pure-JAX reference for correctness checking."""
    h = hidden_states @ params["w_t"] + params["b_t"]
    h = 0.5 * h * (1.0 + lax.erf(h * _INV_SQRT2))
    mean = jnp.mean(h, axis=-1, keepdims=True)
    var = jnp.mean((h - mean) ** 2, axis=-1, keepdims=True)
    h = (h - mean) / jnp.sqrt(var + _LN_EPS)
    h = h * params["ln_g"] + params["ln_b"]
    return h @ params["w_d"] + params["b_d"]


if __name__ == "__main__":
    # Small synthetic config: hidden_size=256, target_size=200 (exercises the
    # lane-padding path), batch=2, seq=37 (74 rows, exercises ragged row pad).
    hidden = 256
    target = 200
    batch, seq = 2, 37

    key = jax.random.PRNGKey(0)
    ks = jax.random.split(key, 7)
    params = {
        "w_t": 0.02 * jax.random.normal(ks[0], (hidden, hidden), jnp.float32),
        "b_t": 0.02 * jax.random.normal(ks[1], (hidden,), jnp.float32),
        "ln_g": jnp.ones((hidden,), jnp.float32)
                + 0.01 * jax.random.normal(ks[2], (hidden,), jnp.float32),
        "ln_b": 0.01 * jax.random.normal(ks[3], (hidden,), jnp.float32),
        "w_d": 0.02 * jax.random.normal(ks[4], (hidden, target), jnp.float32),
        "b_d": 0.02 * jax.random.normal(ks[5], (target,), jnp.float32),
    }
    hidden_states = jax.random.normal(ks[6], (batch, seq, hidden), jnp.float32)

    fn = jax.jit(functools.partial(bert_image_prediction_head, params))
    out = fn(hidden_states)
    jax.block_until_ready(out)

    ref = _reference(params, hidden_states)
    assert out.shape == (batch, seq, target)
    assert jnp.allclose(out, ref, atol=1e-4, rtol=1e-4), float(
        jnp.max(jnp.abs(out - ref)))

    print("KERNEL_OK")
</pallas_src>

<mosaic_0001>
module attributes {stable_mosaic.version = 11 : i64} {
  func.func @_image_pred_head_kernel(%arg0: i32, %arg1: memref<80x256xf32, #tpu.memory_space<vmem>>, %arg2: memref<256x256xf32, #tpu.memory_space<vmem>>, %arg3: memref<1x256xf32, #tpu.memory_space<vmem>>, %arg4: memref<1x256xf32, #tpu.memory_space<vmem>>, %arg5: memref<1x256xf32, #tpu.memory_space<vmem>>, %arg6: memref<256x256xf32, #tpu.memory_space<vmem>>, %arg7: memref<1x256xf32, #tpu.memory_space<vmem>>, %arg8: memref<80x256xf32, #tpu.memory_space<vmem>>) attributes {dimension_semantics = [#tpu.dimension_semantics<parallel>], iteration_bounds = array<i64: 1>, scalar_prefetch = 0 : i64, scratch_operands = 0 : i64, tpu.core_type = #tpu.core_type<tc>, window_params = [{transform_indices = @transform_0, window_bounds = array<i64: 80, 256>}, {pipeline_mode = #tpu.pipeline_mode<synchronous>, transform_indices = @transform_1, window_bounds = array<i64: 256, 256>}, {pipeline_mode = #tpu.pipeline_mode<synchronous>, transform_indices = @transform_2, window_bounds = array<i64: 1, 256>}, {pipeline_mode = #tpu.pipeline_mode<synchronous>, transform_indices = @transform_3, window_bounds = array<i64: 1, 256>}, {pipeline_mode = #tpu.pipeline_mode<synchronous>, transform_indices = @transform_4, window_bounds = array<i64: 1, 256>}, {pipeline_mode = #tpu.pipeline_mode<synchronous>, transform_indices = @transform_5, window_bounds = array<i64: 256, 256>}, {pipeline_mode = #tpu.pipeline_mode<synchronous>, transform_indices = @transform_6, window_bounds = array<i64: 1, 256>}, {transform_indices = @transform_7, window_bounds = array<i64: 80, 256>}]} {
    %c0 = arith.constant 0 : index
    %c0_0 = arith.constant 0 : index
    %0 = vector.load %arg1[%c0, %c0_0] : memref<80x256xf32, #tpu.memory_space<vmem>>, vector<80x256xf32>
    %c0_1 = arith.constant 0 : index
    %c0_2 = arith.constant 0 : index
    %1 = vector.load %arg2[%c0_1, %c0_2] : memref<256x256xf32, #tpu.memory_space<vmem>>, vector<256x256xf32>
    %cst = arith.constant dense<0.000000e+00> : vector<80x256xf32>
    %2 = tpu.matmul %0, %1, %cst {dimension_numbers = #tpu.dot_dimension_numbers<[1], [0], [0], [1], [0, 0, 1, 1], [], []>} : vector<80x256xf32>, vector<256x256xf32>, vector<80x256xf32> -> vector<80x256xf32>
    %c0_3 = arith.constant 0 : index
    %c0_4 = arith.constant 0 : index
    %3 = vector.load %arg3[%c0_3, %c0_4] : memref<1x256xf32, #tpu.memory_space<vmem>>, vector<1x256xf32>
    %4 = vector.broadcast %3 : vector<1x256xf32> to vector<80x256xf32>
    %5 = arith.addf %2, %4 : vector<80x256xf32>
    %cst_5 = arith.constant 5.000000e-01 : f32
    %6 = vector.broadcast %cst_5 : f32 to vector<80x256xf32>
    %7 = arith.mulf %6, %5 : vector<80x256xf32>
    %cst_6 = arith.constant 0.707106769 : f32
    %8 = vector.broadcast %cst_6 : f32 to vector<80x256xf32>
    %9 = arith.mulf %5, %8 : vector<80x256xf32>
    %10 = math.erf %9 : vector<80x256xf32>
    %cst_7 = arith.constant 1.000000e+00 : f32
    %11 = vector.broadcast %cst_7 : f32 to vector<80x256xf32>
    %12 = arith.addf %11, %10 : vector<80x256xf32>
    %13 = arith.mulf %7, %12 : vector<80x256xf32>
    %cst_8 = arith.constant dense<0.000000e+00> : vector<80xf32>
    %14 = vector.multi_reduction <add>, %13, %cst_8 [1] : vector<80x256xf32> to vector<80xf32>
    %15 = vector.shape_cast %14 : vector<80xf32> to vector<80x1xf32>
    %cst_9 = arith.constant 2.560000e+02 : f32
    %16 = vector.broadcast %cst_9 : f32 to vector<80x1xf32>
    %17 = arith.divf %15, %16 : vector<80x1xf32>
    %18 = vector.broadcast %17 : vector<80x1xf32> to vector<80x256xf32>
    %19 = arith.subf %13, %18 : vector<80x256xf32>
    %20 = arith.mulf %19, %19 : vector<80x256xf32>
    %cst_10 = arith.constant dense<0.000000e+00> : vector<80xf32>
    %21 = vector.multi_reduction <add>, %20, %cst_10 [1] : vector<80x256xf32> to vector<80xf32>
    %22 = vector.shape_cast %21 : vector<80xf32> to vector<80x1xf32>
    %cst_11 = arith.constant 2.560000e+02 : f32
    %23 = vector.broadcast %cst_11 : f32 to vector<80x1xf32>
    %24 = arith.divf %22, %23 : vector<80x1xf32>
    %cst_12 = arith.constant 9.99999996E-13 : f32
    %25 = vector.broadcast %cst_12 : f32 to vector<80x1xf32>
    %26 = arith.addf %24, %25 : vector<80x1xf32>
    %27 = math.rsqrt %26 : vector<80x1xf32>
    %28 = vector.broadcast %27 : vector<80x1xf32> to vector<80x256xf32>
    %29 = arith.mulf %19, %28 : vector<80x256xf32>
    %c0_13 = arith.constant 0 : index
    %c0_14 = arith.constant 0 : index
    %30 = vector.load %arg4[%c0_13, %c0_14] : memref<1x256xf32, #tpu.memory_space<vmem>>, vector<1x256xf32>
    %31 = vector.broadcast %30 : vector<1x256xf32> to vector<80x256xf32>
    %32 = arith.mulf %29, %31 : vector<80x256xf32>
    %c0_15 = arith.constant 0 : index
    %c0_16 = arith.constant 0 : index
    %33 = vector.load %arg5[%c0_15, %c0_16] : memref<1x256xf32, #tpu.memory_space<vmem>>, vector<1x256xf32>
    %34 = vector.broadcast %33 : vector<1x256xf32> to vector<80x256xf32>
    %35 = arith.addf %32, %34 : vector<80x256xf32>
    %c0_17 = arith.constant 0 : index
    %c0_18 = arith.constant 0 : index
    %36 = vector.load %arg6[%c0_17, %c0_18] : memref<256x256xf32, #tpu.memory_space<vmem>>, vector<256x256xf32>
    %cst_19 = arith.constant dense<0.000000e+00> : vector<80x256xf32>
    %37 = tpu.matmul %35, %36, %cst_19 {dimension_numbers = #tpu.dot_dimension_numbers<[1], [0], [0], [1], [0, 0, 1, 1], [], []>} : vector<80x256xf32>, vector<256x256xf32>, vector<80x256xf32> -> vector<80x256xf32>
    %c0_20 = arith.constant 0 : index
    %c0_21 = arith.constant 0 : index
    %38 = vector.load %arg7[%c0_20, %c0_21] : memref<1x256xf32, #tpu.memory_space<vmem>>, vector<1x256xf32>
    %39 = vector.broadcast %38 : vector<1x256xf32> to vector<80x256xf32>
    %40 = arith.addf %37, %39 : vector<80x256xf32>
    %c0_22 = arith.constant 0 : index
    %c0_23 = arith.constant 0 : index
    %41 = vector.load %arg8[%c0_22, %c0_23] : memref<80x256xf32, #tpu.memory_space<vmem>>, vector<80x256xf32>
    tpu.vector_store %arg8[%c0_22, %c0_23], %40 {strides = array<i32>} : memref<80x256xf32, #tpu.memory_space<vmem>>, vector<80x256xf32>,
    return
  }
  func.func @transform_0(%arg0: i32) -> (i32, i32) {
    %c0_i32 = arith.constant 0 : i32
    %c0_i32_0 = arith.constant 0 : i32
    return %arg0, %c0_i32 : i32, i32
  }
  func.func @transform_1(%arg0: i32) -> (i32, i32) {
    %c0_i32 = arith.constant 0 : i32
    %c0_i32_0 = arith.constant 0 : i32
    %c0_i32_1 = arith.constant 0 : i32
    return %c0_i32, %c0_i32_0 : i32, i32
  }
  func.func @transform_2(%arg0: i32) -> (i32, i32) {
    %c0_i32 = arith.constant 0 : i32
    %c0_i32_0 = arith.constant 0 : i32
    %c0_i32_1 = arith.constant 0 : i32
    return %c0_i32, %c0_i32_0 : i32, i32
  }
  func.func @transform_3(%arg0: i32) -> (i32, i32) {
    %c0_i32 = arith.constant 0 : i32
    %c0_i32_0 = arith.constant 0 : i32
    %c0_i32_1 = arith.constant 0 : i32
    return %c0_i32, %c0_i32_0 : i32, i32
  }
  func.func @transform_4(%arg0: i32) -> (i32, i32) {
    %c0_i32 = arith.constant 0 : i32
    %c0_i32_0 = arith.constant 0 : i32
    %c0_i32_1 = arith.constant 0 : i32
    return %c0_i32, %c0_i32_0 : i32, i32
  }
  func.func @transform_5(%arg0: i32) -> (i32, i32) {
    %c0_i32 = arith.constant 0 : i32
    %c0_i32_0 = arith.constant 0 : i32
    %c0_i32_1 = arith.constant 0 : i32
    return %c0_i32, %c0_i32_0 : i32, i32
  }
  func.func @transform_6(%arg0: i32) -> (i32, i32) {
    %c0_i32 = arith.constant 0 : i32
    %c0_i32_0 = arith.constant 0 : i32
    %c0_i32_1 = arith.constant 0 : i32
    return %c0_i32, %c0_i32_0 : i32, i32
  }
  func.func @transform_7(%arg0: i32) -> (i32, i32) {
    %c0_i32 = arith.constant 0 : i32
    %c0_i32_0 = arith.constant 0 : i32
    return %arg0, %c0_i32 : i32, i32
  }
}

</mosaic_0001>

<bundles_post_ra>
// kernel: bert_image_prediction_head.1
= control target key start
LH: loop header
LB: loop body
LE: loop exit
PB: predicated region body
PF: predicated region fallthrough
CT: control target
= control target key end

     0   :  { %12 = vsyncpa [#allocation3], 0  ;;  %s1027_s24 = smov [#allocation2]   ;;  %s1686_s0 = inlined_call_operand.vmem [shape: f32[80,256], index: 0, kind: input, shape index: {}]   ;;  %s1687_s1 = inlined_call_operand.hbm [shape: f32[256,256], index: 1, kind: input, shape index: {}]   ;;  %s1688_s2 = inlined_call_operand.vmem [shape: f32[1,256], index: 2, kind: input, shape index: {}]   ;;  %s1689_s3 = inlined_call_operand.vmem [shape: f32[1,256], index: 3, kind: input, shape index: {}]   ;;  %s1690_s4 = inlined_call_operand.vmem [shape: f32[1,256], index: 4, kind: input, shape index: {}]   ;;  %s1691_s5 = inlined_call_operand.vmem [shape: f32[256,256], index: 5, kind: input, shape index: {}]   ;;  %s1692_s6 = inlined_call_operand.vmem [shape: f32[1,256], index: 6, kind: input, shape index: {}]   ;;  %s1693_s7 = inlined_call_operand.vmem [shape: f32[80,256], index: 7, kind: output, shape index: {}]  }
   0x1   :  { %s20_s25 = sshll.u32 %s1027_s24, 4  ;;  %s1003_s28 = scalar_lea.hbm %s1687_s1, 8192  ;;  %s21_s25 = int_to_ptr.vmem [resolvable:$true] %s20_s25 }
   0x2   :  { %p1004_p0 = scmp.ne.s32.totalorder %s1687_s1, %s1003_s28  ;;  %p1007_p1 = scmp.lt.u32.totalorder %s1003_s28, %s1687_s1 }
   0x4   :  { %p1009_p2 = pnand %p1007_p1, %p1004_p0 }
   0x6   :  { %1012 = shalt.err (!%p1009_p2)
}
   0x7   :  { %s1013_s10 = scalar_lea.vmem %s21_s25, 8192  ;;  %p1018_p4 = scmp.lt.s32.totalorder %s21_s25, %s21_s25 }
   0x8   :  { %p1014_p3 = scmp.ne.s32.totalorder %s21_s25, %s1013_s10  ;;  %p1019_p5 = scmp.lt.s32.totalorder %s1013_s10, %s1013_s10 }
   0xa   :  { %p1020_p6 = por %p1019_p5, %p1018_p4 }
   0xc   :  { %p1021_p7 = pnand %p1020_p6, %p1014_p3 }
   0xe   :  { %1024 = shalt.err (!%p1021_p7)
}
   0xf   :  { %s1028_s11 = smov 256   ;;  %s1029_s12 = smov 16  }
  0x10   :  { %26 = dma.hbm_to_vmem [thread:$0]  %s1687_s1, 8192, %s21_s25, [#allocation3], %s1028_s11, %s1028_s11, %s1029_s12  }
  0x11   :  { %1025 = dma.done.wait [#allocation3], 8192  }
  0x12   :  { %1026 = vsyncadd [#allocation3], 4294959104  ;;  %v61_v0 = vld [vmem:[#allocation2 + $0x8] sm:$0xff]  ;;  %v63_v1 = vld [vmem:[#allocation2 + $0x18] sm:$0xff] }
  0x13   :  { %v60_v2 = vld [vmem:[#allocation2] sm:$0xff]  ;;  %v812_v3 = vpack.c.bf16 %v63_v1, %v61_v0  ;;  %v62_v4 = vld [vmem:[#allocation2 + $0x10] sm:$0xff]  ;;  %v65_v5 = vld [vmem:[#allocation2 + $0x28] sm:$0xff] }
  0x14   :  { %v67_v6 = vld [vmem:[#allocation2 + $0x38] sm:$0xff]  ;;  %v814_v7 = vpack.c.bf16 %v62_v4, %v60_v2  ;;  %v64_v9 = vld [vmem:[#allocation2 + $0x20] sm:$0xff]  ;;  %v66_v10 = vld [vmem:[#allocation2 + $0x30] sm:$0xff] }
  0x15   :  { %v816_v8 = vpack.c.bf16 %v67_v6, %v65_v5  ;;  %v69_v11 = vld [vmem:[#allocation2 + $0x48] sm:$0xff]  ;;  %813 = vmatprep.subr.bf16.mxu0 %v812_v3  ;;  %v71_v12 = vld [vmem:[#allocation2 + $0x58] sm:$0xff]  ;;  %v818_v13 = vpack.c.bf16 %v66_v10, %v64_v9  ;;  %v68_v15 = vld [vmem:[#allocation2 + $0x40] sm:$0xff] }
  0x16   :  { %815 = vmatpush1.bf16.msra.mxu0 %v814_v7  ;;  %v820_v14 = vpack.c.bf16 %v71_v12, %v69_v11  ;;  %v70_v16 = vld [vmem:[#allocation2 + $0x50] sm:$0xff]  ;;  %v73_v17 = vld [vmem:[#allocation2 + $0x68] sm:$0xff]  ;;  %v75_v18 = vld [vmem:[#allocation2 + $0x78] sm:$0xff] }
  0x17   :  { %817 = vmatprep.subr.bf16.mxu0 %v816_v8  ;;  %v822_v19 = vpack.c.bf16 %v70_v16, %v68_v15  ;;  %v824_v20 = vpack.c.bf16 %v75_v18, %v73_v17  ;;  %v72_v21 = vld [vmem:[#allocation2 + $0x60] sm:$0xff]  ;;  %v74_v22 = vld [vmem:[#allocation2 + $0x70] sm:$0xff]  ;;  %v77_v23 = vld [vmem:[#allocation2 + $0x88] sm:$0xff] }
  0x18   :  { %v79_v24 = vld [vmem:[#allocation2 + $0x98] sm:$0xff]  ;;  %v826_v25 = vpack.c.bf16 %v74_v22, %v72_v21  ;;  %v76_v27 = vld [vmem:[#allocation2 + $0x80] sm:$0xff]  ;;  %v78_v28 = vld [vmem:[#allocation2 + $0x90] sm:$0xff] }
  0x19   :  { %v828_v26 = vpack.c.bf16 %v79_v24, %v77_v23  ;;  %v81_v29 = vld [vmem:[#allocation2 + $0xa8] sm:$0xff]  ;;  %v83_v30 = vld [vmem:[#allocation2 + $0xb8] sm:$0xff]  ;;  %v830_v31 = vpack.c.bf16 %v78_v28, %v76_v27  ;;  %v80_v33 = vld [vmem:[#allocation2 + $0xa0] sm:$0xff] }
  0x1a   :  { %819 = vmatpush1.bf16.msra.mxu0 %v818_v13  ;;  %v832_v32 = vpack.c.bf16 %v83_v30, %v81_v29  ;;  %v82_v34 = vld [vmem:[#allocation2 + $0xb0] sm:$0xff]  ;;  %v85_v35 = vld [vmem:[#allocation2 + $0xc8] sm:$0xff]  ;;  %v87_v36 = vld [vmem:[#allocation2 + $0xd8] sm:$0xff] }
  0x1b   :  { %821 = vmatprep.subr.bf16.mxu0 %v820_v14  ;;  %v834_v37 = vpack.c.bf16 %v82_v34, %v80_v33  ;;  %v836_v38 = vpack.c.bf16 %v87_v36, %v85_v35  ;;  %v84_v39 = vld [vmem:[#allocation2 + $0xc0] sm:$0xff]  ;;  %v86_v40 = vld [vmem:[#allocation2 + $0xd0] sm:$0xff]  ;;  %v41_v41 = vld [vmem:[%s1686_s0 + $0x8] sm:$0xff] }
  0x1c   :  { %v89_v42 = vld [vmem:[#allocation2 + $0xe8] sm:$0xff]  ;;  %v91_v43 = vld [vmem:[#allocation2 + $0xf8] sm:$0xff]  ;;  %200 = vmatprep.mubr.f32.mxu0 %v41_v41  ;;  %v838_v44 = vpack.c.bf16 %v86_v40, %v84_v39  ;;  %v88_v46 = vld [vmem:[#allocation2 + $0xe0] sm:$0xff] }
  0x1d   :  { %v840_v45 = vpack.c.bf16 %v91_v43, %v89_v42  ;;  %v90_v47 = vld [vmem:[#allocation2 + $0xf0] sm:$0xff]  ;;  %v93_v48 = vld [vmem:[#allocation2 + $0x108] sm:$0xff]  ;;  %v95_v49 = vld [vmem:[#allocation2 + $0x118] sm:$0xff] }
  0x1e   :  { %823 = vmatpush1.bf16.msra.mxu0 %v822_v19  ;;  %v842_v50 = vpack.c.bf16 %v90_v47, %v88_v46  ;;  %v844_v51 = vpack.c.bf16 %v95_v49, %v93_v48  ;;  %v92_v52 = vld [vmem:[#allocation2 + $0x100] sm:$0xff]  ;;  %v94_v53 = vld [vmem:[#allocation2 + $0x110] sm:$0xff]  ;;  %v97_v54 = vld [vmem:[#allocation2 + $0x128] sm:$0xff] }
  0x1f   :  { %825 = vmatprep.subr.bf16.mxu0 %v824_v20  ;;  %v99_v55 = vld [vmem:[#allocation2 + $0x138] sm:$0xff]  ;;  %v846_v56 = vpack.c.bf16 %v94_v53, %v92_v52  ;;  %v96_v58 = vld [vmem:[#allocation2 + $0x120] sm:$0xff]  ;;  %v98_v59 = vld [vmem:[#allocation2 + $0x130] sm:$0xff]  ;;  %v126_v52 = vlaneseq }
  0x20   :  { %v848_v57 = vpack.c.bf16 %v99_v55, %v97_v54  ;;  %v101_v60 = vld [vmem:[#allocation2 + $0x148] sm:$0xff]  ;;  %v103_v61 = vld [vmem:[#allocation2 + $0x158] sm:$0xff]  ;;  %v850_v62 = vpack.c.bf16 %v98_v59, %v96_v58  ;;  %v100_v0 = vld [vmem:[#allocation2 + $0x140] sm:$0xff] }
  0x21   :  { %v852_v63 = vpack.c.bf16 %v103_v61, %v101_v60  ;;  %v102_v1 = vld [vmem:[#allocation2 + $0x150] sm:$0xff]  ;;  %v105_v2 = vld [vmem:[#allocation2 + $0x168] sm:$0xff]  ;;  %v107_v3 = vld [vmem:[#allocation2 + $0x178] sm:$0xff]  ;;  %v127_v53 = vshrl.u32 %v126_v52, 7 }
  0x22   :  { %827 = vmatpush1.bf16.msra.mxu0 %v826_v25  ;;  %v854_v4 = vpack.c.bf16 %v102_v1, %v100_v0  ;;  %v856_v5 = vpack.c.bf16 %v107_v3, %v105_v2  ;;  %v104_v6 = vld [vmem:[#allocation2 + $0x160] sm:$0xff]  ;;  %v106_v7 = vld [vmem:[#allocation2 + $0x170] sm:$0xff]  ;;  %v109_v8 = vld [vmem:[#allocation2 + $0x188] sm:$0xff] }
  0x23   :  { %829 = vmatprep.subr.bf16.mxu0 %v828_v26  ;;  %v111_v9 = vld [vmem:[#allocation2 + $0x198] sm:$0xff]  ;;  %v858_v10 = vpack.c.bf16 %v106_v7, %v104_v6  ;;  %v108_v12 = vld [vmem:[#allocation2 + $0x180] sm:$0xff]  ;;  %v110_v13 = vld [vmem:[#allocation2 + $0x190] sm:$0xff]  ;;  %v1142_v54 = vsub.s32 0, %v127_v53 }
  0x24   :  { %v860_v11 = vpack.c.bf16 %v111_v9, %v109_v8  ;;  %v113_v14 = vld [vmem:[#allocation2 + $0x1a8] sm:$0xff]  ;;  %v115_v15 = vld [vmem:[#allocation2 + $0x1b8] sm:$0xff]  ;;  %v862_v16 = vpack.c.bf16 %v110_v13, %v108_v12  ;;  %v112_v18 = vld [vmem:[#allocation2 + $0x1a0] sm:$0xff] }
  0x25   :  { %v864_v17 = vpack.c.bf16 %v115_v15, %v113_v14  ;;  %v114_v19 = vld [vmem:[#allocation2 + $0x1b0] sm:$0xff]  ;;  %v117_v20 = vld [vmem:[#allocation2 + $0x1c8] sm:$0xff]  ;;  %v119_v21 = vld [vmem:[#allocation2 + $0x1d8] sm:$0xff] }
  0x26   :  { %831 = vmatpush1.bf16.msra.mxu0 %v830_v31  ;;  %v866_v22 = vpack.c.bf16 %v114_v19, %v112_v18  ;;  %v868_v23 = vpack.c.bf16 %v119_v21, %v117_v20  ;;  %v116_v24 = vld [vmem:[#allocation2 + $0x1c0] sm:$0xff]  ;;  %v118_v25 = vld [vmem:[#allocation2 + $0x1d0] sm:$0xff]  ;;  %v121_v26 = vld [vmem:[#allocation2 + $0x1e8] sm:$0xff] }
  0x27   :  { %833 = vmatprep.subr.bf16.mxu0 %v832_v32  ;;  %v123_v27 = vld [vmem:[#allocation2 + $0x1f8] sm:$0xff]  ;;  %v870_v28 = vpack.c.bf16 %v118_v25, %v116_v24  ;;  %v120_v30 = vld [vmem:[#allocation2 + $0x1e0] sm:$0xff]  ;;  %v122_v31 = vld [vmem:[#allocation2 + $0x1f0] sm:$0xff] }
  0x28   :  { %v872_v29 = vpack.c.bf16 %v123_v27, %v121_v26  ;;  %v874_v32 = vpack.c.bf16 %v122_v31, %v120_v30  ;;  %v40_v33 = vld [vmem:[%s1686_s0] sm:$0xff]  ;;  %v43_v34 = vld [vmem:[%s1686_s0 + $0x18] sm:$0xff]  ;;  %v42_v35 = vld [vmem:[%s1686_s0 + $0x10] sm:$0xff] }
  0x29   :  { %v45_v36 = vld [vmem:[%s1686_s0 + $0x28] sm:$0xff]  ;;  %v46_v39 = vld [vmem:[%s1686_s0 + $0x30] sm:$0xff]  ;;  %v48_v41 = vld [vmem:[%s1686_s0 + $0x40] sm:$0xff] }
  0x2a   :  { %835 = vmatpush1.bf16.msra.mxu0 %v834_v37  ;;  %v44_v37 = vld [vmem:[%s1686_s0 + $0x20] sm:$0xff]  ;;  %v49_v40 = vld [vmem:[%s1686_s0 + $0x48] sm:$0xff]  ;;  %v51_v42 = vld [vmem:[%s1686_s0 + $0x58] sm:$0xff] }
  0x2b   :  { %837 = vmatprep.subr.bf16.mxu0 %v836_v38  ;;  %v47_v38 = vld [vmem:[%s1686_s0 + $0x38] sm:$0xff]  ;;  %v50_v43 = vld [vmem:[%s1686_s0 + $0x50] sm:$0xff]  ;;  %v57_v48 = vld [vmem:[%s1686_s0 + $0x88] sm:$0xff] }
  0x2c   :  { %v55_v46 = vld [vmem:[%s1686_s0 + $0x78] sm:$0xff]  ;;  %v54_v47 = vld [vmem:[%s1686_s0 + $0x70] sm:$0xff]  ;;  %v56_v49 = vld [vmem:[%s1686_s0 + $0x80] sm:$0xff] }
  0x2d   :  { %v124_v55 = vld [vmem:[%s1688_s2] sm:$0x3] }
  0x2e   :  { %839 = vmatpush1.bf16.msra.mxu0 %v838_v44  ;;  %v53_v44 = vld [vmem:[%s1686_s0 + $0x68] sm:$0xff] }
  0x2f   :  { %841 = vmatprep.subr.bf16.mxu0 %v840_v45  ;;  %v52_v45 = vld [vmem:[%s1686_s0 + $0x60] sm:$0xff] }
  0x32   :  { %843 = vmatpush1.bf16.msra.mxu0 %v842_v50  ;;  %v59_v50 = vld [vmem:[%s1686_s0 + $0x98] sm:$0xff] }
  0x33   :  { %845 = vmatprep.subr.bf16.mxu0 %v844_v51  ;;  %v58_v51 = vld [vmem:[%s1686_s0 + $0x90] sm:$0xff] }
  0x36   :  { %847 = vmatpush1.bf16.msra.mxu0 %v846_v56  ;;  %v1147_v56 = vsub.s32 1, %v127_v53 }
  0x37   :  { %849 = vmatprep.subr.bf16.mxu0 %v848_v57  ;;  %v1150_v57 = vrot.slane %v124_v55, %v1142_v54 }
  0x38   :  { %v1153_v58 = vrot.slane %v124_v55, %v1147_v56 }
  0x3a   :  { %851 = vmatpush1.bf16.msra.mxu0 %v850_v62 }
  0x3b   :  { %853 = vmatprep.subr.bf16.mxu0 %v852_v63 }
  0x3e   :  { %855 = vmatpush1.bf16.msra.mxu0 %v854_v4 }
  0x3f   :  { %857 = vmatprep.subr.bf16.mxu0 %v856_v5 }
  0x42   :  { %859 = vmatpush1.bf16.msra.mxu0 %v858_v10 }
  0x43   :  { %861 = vmatprep.subr.bf16.mxu0 %v860_v11 }
  0x46   :  { %863 = vmatpush1.bf16.msra.mxu0 %v862_v16 }
  0x47   :  { %865 = vmatprep.subr.bf16.mxu0 %v864_v17 }
  0x4a   :  { %867 = vmatpush1.bf16.msra.mxu0 %v866_v22 }
  0x4b   :  { %869 = vmatprep.subr.bf16.mxu0 %v868_v23 }
  0x4e   :  { %871 = vmatpush1.bf16.msra.mxu0 %v870_v28 }
  0x4f   :  { %873 = vmatprep.subr.bf16.mxu0 %v872_v29 }
  0x52   :  { %875 = vmatpush1.bf16.msra.mxu0 %v874_v32 }
  0x55   :  { %201 = vmatmul.mubr.f32.vlgmr.msra.gmra.mrb[0].mxu0 %v40_v33 }
  0x56   :  { %206 = vmatprep.mubr.f32.mxu0 %v43_v34 }
  0x59   :  { %207 = vmatmul.mubr.f32.gmra.mrb[2].mxu0 %v42_v35 }
  0x5a   :  { %212 = vmatprep.mubr.f32.mxu0 %v45_v36 }
  0x5d   :  { %213 = vmatmul.mubr.f32.gmra.mrb[4].mxu0 %v44_v37 }
  0x5e   :  { %218 = vmatprep.mubr.f32.mxu0 %v47_v38 }
  0x61   :  { %219 = vmatmul.mubr.f32.gmra.mrb[6].mxu0 %v46_v39 }
  0x62   :  { %224 = vmatprep.mubr.f32.mxu0 %v49_v40 }
  0x65   :  { %225 = vmatmul.mubr.f32.gmra.mrb[8].mxu0 %v48_v41 }
  0x66   :  { %230 = vmatprep.mubr.f32.mxu0 %v51_v42 }
  0x69   :  { %231 = vmatmul.mubr.f32.gmra.mrb[10].mxu0 %v50_v43 }
  0x6a   :  { %236 = vmatprep.mubr.f32.mxu0 %v53_v44 }
  0x6d   :  { %237 = vmatmul.mubr.f32.gmra.mrb[12].mxu0 %v52_v45 }
  0x6e   :  { %242 = vmatprep.mubr.f32.mxu0 %v55_v46 }
  0x71   :  { %243 = vmatmul.mubr.f32.gmra.mrb[14].mxu0 %v54_v47 }
  0x72   :  { %248 = vmatprep.mubr.f32.mxu0 %v57_v48 }
  0x75   :  { %249 = vmatmul.mubr.f32.gmra.mrb[16].mxu0 %v56_v49 }
  0x76   :  { %254 = vmatprep.mubr.f32.mxu0 %v59_v50 }
  0x79   :  { %255 = vmatmul.mubr.f32.gmra.mrb[18].mxu0 %v58_v51 }
 0x128   :  { %v202_v59 = vpop.f32.mrb[0].mxu0 }
 0x129   :  { %v203_v60 = vadd.f32 %v202_v59, %v1150_v57  ;;  %v204_v61 = vpop.f32.mrb[1].mxu0 }
 0x12a   :  { %v205_v62 = vadd.f32 %v204_v61, %v1153_v58 }
 0x12b   :  { %v281_v63 = vmul.f32 0.70710677, %v203_v60  ;;  %v261_v20 = vmul.f32 0.5, %v203_v60 }
 0x12c   :  { %v282_v0 = vmul.f32 0.70710677, %v205_v62  ;;  %v208_v1 = vpop.f32.mrb[2].mxu0  ;;  %v262_v24 = vmul.f32 0.5, %v205_v62 }
 0x12d   :  { %943 = verf.f32 %v281_v63  ;;  %v209_v2 = vadd.f32 %v208_v1, %v1150_v57  ;;  %v210_v3 = vpop.f32.mrb[3].mxu0 }
 0x12e   :  { %945 = verf.f32 %v282_v0  ;;  %v211_v4 = vadd.f32 %v210_v3, %v1153_v58 }
 0x12f   :  { %v283_v5 = vmul.f32 0.70710677, %v209_v2  ;;  %v263_v34 = vmul.f32 0.5, %v209_v2 }
 0x130   :  { %v284_v6 = vmul.f32 0.70710677, %v211_v4  ;;  %v214_v7 = vpop.f32.mrb[4].mxu0  ;;  %v264_v35 = vmul.f32 0.5, %v211_v4 }
 0x131   :  { %947 = verf.f32 %v283_v5  ;;  %v215_v8 = vadd.f32 %v214_v7, %v1150_v57  ;;  %v216_v9 = vpop.f32.mrb[5].mxu0 }
 0x132   :  { %949 = verf.f32 %v284_v6  ;;  %v217_v10 = vadd.f32 %v216_v9, %v1153_v58 }
 0x133   :  { %v285_v11 = vmul.f32 0.70710677, %v215_v8  ;;  %v265_v49 = vmul.f32 0.5, %v215_v8 }
 0x134   :  { %v286_v12 = vmul.f32 0.70710677, %v217_v10  ;;  %v220_v13 = vpop.f32.mrb[6].mxu0  ;;  %v266_v50 = vmul.f32 0.5, %v217_v10 }
 0x135   :  { %951 = verf.f32 %v285_v11  ;;  %v221_v14 = vadd.f32 %v220_v13, %v1150_v57  ;;  %v222_v15 = vpop.f32.mrb[7].mxu0 }
 0x136   :  { %953 = verf.f32 %v286_v12  ;;  %v223_v16 = vadd.f32 %v222_v15, %v1153_v58 }
 0x137   :  { %v944_v17 = vpop.eup %943  ;;  %v287_v18 = vmul.f32 0.70710677, %v221_v14  ;;  %v267_v4 = vmul.f32 0.5, %v221_v14 }
 0x138   :  { %v946_v19 = vpop.eup %945  ;;  %v288_v21 = vmul.f32 0.70710677, %v223_v16  ;;  %v226_v22 = vpop.f32.mrb[8].mxu0  ;;  %v321_v23 = vadd.f32 1.0, %v944_v17  ;;  %v268_v5 = vmul.f32 0.5, %v223_v16 }
 0x139   :  { %955 = verf.f32 %v287_v18  ;;  %v1164_v25 = vadd.f32 %v226_v22, %v1150_v57  ;;  %v228_v26 = vpop.f32.mrb[9].mxu0  ;;  %v322_v27 = vadd.f32 1.0, %v946_v19 }
 0x13a   :  { %957 = verf.f32 %v288_v21  ;;  %v229_v28 = vadd.f32 %v228_v26, %v1153_v58  ;;  %v1167_v29 = vmul.f32 %v321_v23, %v261_v20 }
 0x13b   :  { %v948_v30 = vpop.eup %947  ;;  %v289_v31 = vmul.f32 0.70710677, %v1164_v25  ;;  %v1170_v32 = vmul.f32 %v322_v27, %v262_v24  ;;  %v269_v19 = vmul.f32 0.5, %v1164_v25 }
 0x13c   :  { %v950_v33 = vpop.eup %949  ;;  %v290_v36 = vmul.f32 0.70710677, %v229_v28  ;;  %v232_v37 = vpop.f32.mrb[10].mxu0  ;;  %v323_v38 = vadd.f32 1.0, %v948_v30  ;;  %v270_v20 = vmul.f32 0.5, %v229_v28 }
 0x13d   :  { %959 = verf.f32 %v289_v31  ;;  %v1173_v39 = vadd.f32 %v232_v37, %v1150_v57  ;;  %v234_v40 = vpop.f32.mrb[11].mxu0  ;;  %v361_v41 = vadd.f32 %v1170_v32, %v1167_v29  ;;  %v324_v42 = vadd.f32 1.0, %v950_v33 }
 0x13e   :  { %961 = verf.f32 %v290_v36  ;;  %v235_v43 = vadd.f32 %v234_v40, %v1153_v58  ;;  %v1178_v44 = vmul.f32 %v323_v38, %v263_v34 }
 0x13f   :  { %v952_v45 = vpop.eup %951  ;;  %v291_v46 = vmul.f32 0.70710677, %v1173_v39  ;;  %362 = vadd.xlane.f32.xlu0 %v361_v41  ;;  %v1181_v47 = vmul.f32 %v324_v42, %v264_v35  ;;  %v271_v36 = vmul.f32 0.5, %v1173_v39 }
 0x140   :  { %v954_v48 = vpop.eup %953  ;;  %v292_v51 = vmul.f32 0.70710677, %v235_v43  ;;  %v238_v52 = vpop.f32.mrb[12].mxu0  ;;  %v325_v53 = vadd.f32 1.0, %v952_v45  ;;  %v272_v37 = vmul.f32 0.5, %v235_v43 }
 0x141   :  { %963 = verf.f32 %v291_v46  ;;  %v1184_v55 = vadd.f32 %v238_v52, %v1150_v57  ;;  %v240_v59 = vpop.f32.mrb[13].mxu0  ;;  %v364_v60 = vadd.f32 %v1181_v47, %v1178_v44  ;;  %v326_v61 = vadd.f32 1.0, %v954_v48 }
 0x142   :  { %965 = verf.f32 %v292_v51  ;;  %v1189_v62 = vadd.f32 %v240_v59, %v1153_v58  ;;  %v1191_v63 = vmul.f32 %v325_v53, %v265_v49 }
 0x143   :  { %v956_v0 = vpop.eup %955  ;;  %v293_v1 = vmul.f32 0.70710677, %v1184_v55  ;;  %365 = vadd.xlane.f32.xlu0 %v364_v60  ;;  %v1194_v2 = vmul.f32 %v326_v61, %v266_v50  ;;  %v273_v53 = vmul.f32 0.5, %v1184_v55 }
 0x144   :  { %v958_v3 = vpop.eup %957  ;;  %v294_v6 = vmul.f32 0.70710677, %v1189_v62  ;;  %v244_v7 = vpop.f32.mrb[14].mxu0  ;;  %v327_v8 = vadd.f32 1.0, %v956_v0  ;;  %v274_v60 = vmul.f32 0.5, %v1189_v62 }
 0x145   :  { %967 = verf.f32 %v293_v1  ;;  %v245_v9 = vadd.f32 %v244_v7, %v1150_v57  ;;  %v246_v10 = vpop.f32.mrb[15].mxu0  ;;  %v367_v11 = vadd.f32 %v1194_v2, %v1191_v63  ;;  %v328_v12 = vadd.f32 1.0, %v958_v3 }
 0x146   :  { %969 = verf.f32 %v294_v6  ;;  %v247_v13 = vadd.f32 %v246_v10, %v1153_v58  ;;  %v1201_v15 = vmul.f32 %v327_v8, %v267_v4 }
 0x147   :  { %v960_v17 = vpop.eup %959  ;;  %v295_v14 = vmul.f32 0.70710677, %v245_v9  ;;  %368 = vadd.xlane.f32.xlu1 %v367_v11  ;;  %v1203_v16 = vmul.f32 %v328_v12, %v268_v5  ;;  %v275_v5 = vmul.f32 0.5, %v245_v9 }
 0x148   :  { %v962_v18 = vpop.eup %961  ;;  %v296_v21 = vmul.f32 0.70710677, %v247_v13  ;;  %v250_v22 = vpop.f32.mrb[16].mxu0  ;;  %v329_v23 = vadd.f32 1.0, %v960_v17  ;;  %v276_v55 = vmul.f32 0.5, %v247_v13 }
 0x149   :  { %971 = verf.f32 %v295_v14  ;;  %v251_v24 = vadd.f32 %v250_v22, %v1150_v57  ;;  %v252_v26 = vpop.f32.mrb[17].mxu0  ;;  %v370_v27 = vadd.f32 %v1203_v16, %v1201_v15  ;;  %v330_v30 = vadd.f32 1.0, %v962_v18 }
 0x14a   :  { %973 = verf.f32 %v296_v21  ;;  %v253_v31 = vadd.f32 %v252_v26, %v1153_v58  ;;  %v1210_v33 = vmul.f32 %v329_v23, %v269_v19 }
 0x14b   :  { %v964_v34 = vpop.eup %963  ;;  %v297_v35 = vmul.f32 0.70710677, %v251_v24  ;;  %371 = vadd.xlane.f32.xlu1 %v370_v27  ;;  %v1212_v25 = vmul.f32 %v330_v30, %v270_v20  ;;  %v277_v17 = vmul.f32 0.5, %v251_v24 }
 0x14c   :  { %v966_v28 = vpop.eup %965  ;;  %v298_v38 = vmul.f32 0.70710677, %v253_v31  ;;  %v256_v40 = vpop.f32.mrb[18].mxu0  ;;  %v331_v41 = vadd.f32 1.0, %v964_v34  ;;  %v278_v18 = vmul.f32 0.5, %v253_v31 }
 0x14d   :  { %975 = verf.f32 %v297_v35  ;;  %v257_v42 = vadd.f32 %v256_v40, %v1150_v57  ;;  %v258_v45 = vpop.f32.mrb[19].mxu0  ;;  %v373_v46 = vadd.f32 %v1212_v25, %v1210_v33  ;;  %v332_v48 = vadd.f32 1.0, %v966_v28  ;;  %v587_v28 = vld [vmem:[%s1691_s5 + $0x8] sm:$0xff]  ;;  %v588_v40 = vld [vmem:[%s1691_s5 + $0x10] sm:$0xff] }
 0x14e   :  { %977 = verf.f32 %v298_v38  ;;  %v259_v49 = vadd.f32 %v258_v45, %v1153_v58  ;;  %v1219_v50 = vmul.f32 %v331_v41, %v271_v36  ;;  %v589_v36 = vld [vmem:[%s1691_s5 + $0x18] sm:$0xff]  ;;  %v591_v41 = vld [vmem:[%s1691_s5 + $0x28] sm:$0xff] }
 0x14f   :  { %v968_v51 = vpop.eup %967  ;;  %v299_v52 = vmul.f32 0.70710677, %v257_v42  ;;  %374 = vadd.xlane.f32.xlu0 %v373_v46  ;;  %v1221_v39 = vmul.f32 %v332_v48, %v272_v37  ;;  %v279_v23 = vmul.f32 0.5, %v257_v42  ;;  %v586_v37 = vld [vmem:[%s1691_s5] sm:$0xff]  ;;  %v876_v38 = vpack.c.bf16 %v589_v36, %v587_v28  ;;  %v593_v42 = vld [vmem:[%s1691_s5 + $0x38] sm:$0xff] }
 0x150   :  { %v970_v43 = vpop.eup %969  ;;  %v300_v59 = vmul.f32 0.70710677, %v259_v49  ;;  %v333_v57 = vadd.f32 1.0, %v968_v51  ;;  %v280_v27 = vmul.f32 0.5, %v259_v49  ;;  %v878_v45 = vpack.c.bf16 %v588_v40, %v586_v37  ;;  %v590_v48 = vld [vmem:[%s1691_s5 + $0x20] sm:$0xff]  ;;  %v592_v49 = vld [vmem:[%s1691_s5 + $0x30] sm:$0xff] }
 0x151   :  { %979 = verf.f32 %v299_v52  ;;  %v376_v61 = vadd.f32 %v1221_v39, %v1219_v50  ;;  %v334_v0 = vadd.f32 1.0, %v970_v43  ;;  %v880_v46 = vpack.c.bf16 %v593_v42, %v591_v41  ;;  %v595_v51 = vld [vmem:[%s1691_s5 + $0x48] sm:$0xff]  ;;  %877 = vmatprep.subr.bf16.mxu1 %v876_v38  ;;  %v597_v52 = vld [vmem:[%s1691_s5 + $0x58] sm:$0xff]  ;;  %v614_v38 = vld [vmem:[%s1691_s5 + $0xe0] sm:$0xff] }
 0x152   :  { %981 = verf.f32 %v300_v59  ;;  %v1227_v58 = vmul.f32 %v333_v57, %v273_v53  ;;  %879 = vmatpush1.bf16.msra.mxu1 %v878_v45  ;;  %v882_v43 = vpack.c.bf16 %v592_v49, %v590_v48  ;;  %v884_v53 = vpack.c.bf16 %v597_v52, %v595_v51  ;;  %v594_v59 = vld [vmem:[%s1691_s5 + $0x40] sm:$0xff]  ;;  %v596_v57 = vld [vmem:[%s1691_s5 + $0x50] sm:$0xff]  ;;  %v617_v28 = vld [vmem:[%s1691_s5 + $0xf8] sm:$0xff] }
 0x153   :  { %v972_v1 = vpop.eup %971  ;;  %377 = vadd.xlane.f32.xlu1 %v376_v61  ;;  %v1229_v3 = vmul.f32 %v334_v0, %v274_v60  ;;  %881 = vmatprep.subr.bf16.mxu1 %v880_v46  ;;  %v599_v60 = vld [vmem:[%s1691_s5 + $0x68] sm:$0xff]  ;;  %v601_v61 = vld [vmem:[%s1691_s5 + $0x78] sm:$0xff]  ;;  %v886_v0 = vpack.c.bf16 %v596_v57, %v594_v59  ;;  %v616_v40 = vld [vmem:[%s1691_s5 + $0xf0] sm:$0xff] }
 0x154   :  { %v974_v4 = vpop.eup %973  ;;  %v335_v6 = vadd.f32 1.0, %v972_v1  ;;  %v888_v1 = vpack.c.bf16 %v601_v61, %v599_v60  ;;  %v619_v41 = vld [vmem:[%s1691_s5 + $0x108] sm:$0xff]  ;;  %v621_v42 = vld [vmem:[%s1691_s5 + $0x118] sm:$0xff]  ;;  %v906_v45 = vpack.c.bf16 %v616_v40, %v614_v38  ;;  %v618_v48 = vld [vmem:[%s1691_s5 + $0x100] sm:$0xff] }
 0x155   :  { %v379_v7 = vadd.f32 %v1229_v3, %v1227_v58  ;;  %v336_v62 = vadd.f32 1.0, %v974_v4  ;;  %v598_v4 = vld [vmem:[%s1691_s5 + $0x60] sm:$0xff]  ;;  %v908_v46 = vpack.c.bf16 %v621_v42, %v619_v41  ;;  %v620_v49 = vld [vmem:[%s1691_s5 + $0x110] sm:$0xff]  ;;  %v623_v51 = vld [vmem:[%s1691_s5 + $0x128] sm:$0xff] }
 0x156   :  { %v1233_v8 = vmul.f32 %v335_v6, %v275_v5  ;;  %883 = vmatpush1.bf16.msra.mxu1 %v882_v43  ;;  %v600_v5 = vld [vmem:[%s1691_s5 + $0x70] sm:$0xff]  ;;  %v603_v6 = vld [vmem:[%s1691_s5 + $0x88] sm:$0xff]  ;;  %v625_v52 = vld [vmem:[%s1691_s5 + $0x138] sm:$0xff]  ;;  %v910_v43 = vpack.c.bf16 %v620_v49, %v618_v48 }
 0x157   :  { %v976_v10 = vpop.eup %975  ;;  %380 = vadd.xlane.f32.xlu0 %v379_v7  ;;  %v1235_v11 = vmul.f32 %v336_v62, %v276_v55  ;;  %885 = vmatprep.subr.bf16.mxu1 %v884_v53  ;;  %v605_v55 = vld [vmem:[%s1691_s5 + $0x98] sm:$0xff]  ;;  %v890_v7 = vpack.c.bf16 %v600_v5, %v598_v4  ;;  %v912_v53 = vpack.c.bf16 %v625_v52, %v623_v51  ;;  %v622_v59 = vld [vmem:[%s1691_s5 + $0x120] sm:$0xff]  ;;  %v624_v57 = vld [vmem:[%s1691_s5 + $0x130] sm:$0xff] }
 0x158   :  { %v978_v12 = vpop.eup %977  ;;  %v337_v14 = vadd.f32 1.0, %v976_v10  ;;  %v892_v62 = vpack.c.bf16 %v605_v55, %v603_v6  ;;  %v602_v10 = vld [vmem:[%s1691_s5 + $0x80] sm:$0xff]  ;;  %v627_v60 = vld [vmem:[%s1691_s5 + $0x148] sm:$0xff]  ;;  %v629_v61 = vld [vmem:[%s1691_s5 + $0x158] sm:$0xff] }
 0x159   :  { %v382_v19 = vadd.f32 %v1235_v11, %v1233_v8  ;;  %v338_v9 = vadd.f32 1.0, %v978_v12  ;;  %v604_v12 = vld [vmem:[%s1691_s5 + $0x90] sm:$0xff]  ;;  %v626_v4 = vld [vmem:[%s1691_s5 + $0x140] sm:$0xff]  ;;  %v631_v49 = vld [vmem:[%s1691_s5 + $0x168] sm:$0xff] }
 0x15a   :  { %v1239_v20 = vmul.f32 %v337_v14, %v277_v17  ;;  %887 = vmatpush1.bf16.msra.mxu1 %v886_v0  ;;  %v607_v17 = vld [vmem:[%s1691_s5 + $0xa8] sm:$0xff]  ;;  %v609_v14 = vld [vmem:[%s1691_s5 + $0xb8] sm:$0xff]  ;;  %v914_v0 = vpack.c.bf16 %v624_v57, %v622_v59  ;;  %v628_v5 = vld [vmem:[%s1691_s5 + $0x150] sm:$0xff] }
 0x15b   :  { %v980_v13 = vpop.eup %979  ;;  %383 = vadd.xlane.f32.xlu1 %v382_v19  ;;  %v1241_v21 = vmul.f32 %v338_v9, %v278_v18  ;;  %889 = vmatprep.subr.bf16.mxu1 %v888_v1  ;;  %v894_v18 = vpack.c.bf16 %v604_v12, %v602_v10  ;;  %v896_v19 = vpack.c.bf16 %v609_v14, %v607_v17  ;;  %v606_v9 = vld [vmem:[%s1691_s5 + $0xa0] sm:$0xff]  ;;  %v632_v59 = vld [vmem:[%s1691_s5 + $0x170] sm:$0xff] }
 0x15c   :  { %v982_v22 = vpop.eup %981  ;;  %v339_v26 = vadd.f32 1.0, %v980_v13  ;;  %v608_v13 = vld [vmem:[%s1691_s5 + $0xb0] sm:$0xff]  ;;  %v916_v1 = vpack.c.bf16 %v629_v61, %v627_v60  ;;  %v918_v6 = vpack.c.bf16 %v628_v5, %v626_v4 }
 0x15d   :  { %v385_v30 = vadd.f32 %v1241_v21, %v1239_v20  ;;  %v340_v24 = vadd.f32 1.0, %v982_v22  ;;  %v611_v22 = vld [vmem:[%s1691_s5 + $0xc8] sm:$0xff] }
 0x15e   :  { %v1245_v34 = vmul.f32 %v339_v26, %v279_v23  ;;  %891 = vmatpush1.bf16.msra.mxu1 %v890_v7  ;;  %v613_v23 = vld [vmem:[%s1691_s5 + $0xd8] sm:$0xff]  ;;  %v898_v26 = vpack.c.bf16 %v608_v13, %v606_v9 }
 0x15f   :  { %386 = vadd.xlane.f32.xlu0 %v385_v30  ;;  %v1247_v31 = vmul.f32 %v340_v24, %v280_v27  ;;  %893 = vmatprep.subr.bf16.mxu1 %v892_v62  ;;  %v900_v27 = vpack.c.bf16 %v613_v23, %v611_v22  ;;  %v610_v30 = vld [vmem:[%s1691_s5 + $0xc0] sm:$0xff]  ;;  %v612_v24 = vld [vmem:[%s1691_s5 + $0xd0] sm:$0xff] }
 0x160   :  { %v902_v36 = vpack.c.bf16 %v612_v24, %v610_v30 }
 0x161   :  { %v388_v35 = vadd.f32 %v1247_v31, %v1245_v34 }
 0x162   :  { %895 = vmatpush1.bf16.msra.mxu1 %v894_v18 }
 0x163   :  { %389 = vadd.xlane.f32.xlu1 %v388_v35  ;;  %897 = vmatprep.subr.bf16.mxu1 %v896_v19  ;;  %v615_v35 = vld [vmem:[%s1691_s5 + $0xe8] sm:$0xff] }
 0x164   :  { %v904_v37 = vpack.c.bf16 %v617_v28, %v615_v35 }
 0x166   :  { %899 = vmatpush1.bf16.msra.mxu1 %v898_v26 }
 0x167   :  { %901 = vmatprep.subr.bf16.mxu1 %v900_v27 }
 0x16a   :  { %903 = vmatpush1.bf16.msra.mxu1 %v902_v36 }
 0x16b   :  { %905 = vmatprep.subr.bf16.mxu1 %v904_v37 }
 0x16e   :  { %907 = vmatpush1.bf16.msra.mxu1 %v906_v45 }
 0x16f   :  { %909 = vmatprep.subr.bf16.mxu1 %v908_v46 }
 0x172   :  { %911 = vmatpush1.bf16.msra.mxu1 %v910_v43 }
 0x173   :  { %913 = vmatprep.subr.bf16.mxu1 %v912_v53  ;;  %v630_v53 = vld [vmem:[%s1691_s5 + $0x160] sm:$0xff] }
 0x174   :  { %v922_v60 = vpack.c.bf16 %v632_v59, %v630_v53 }
 0x176   :  { %915 = vmatpush1.bf16.msra.mxu1 %v914_v0  ;;  %v635_v0 = vld [vmem:[%s1691_s5 + $0x188] sm:$0xff] }
 0x177   :  { %917 = vmatprep.subr.bf16.mxu1 %v916_v1  ;;  %v637_v1 = vld [vmem:[%s1691_s5 + $0x198] sm:$0xff] }
 0x17a   :  { %919 = vmatpush1.bf16.msra.mxu1 %v918_v6 }
 0x1cc   :  { %v363_v55 = vpop.xlane.xlu0 %362 }
 0x1cd   :  { %v392_v7 = vmul.f32 0.00390625, %v363_v55  ;;  %v924_v55 = vpack.c.bf16 %v637_v1, %v635_v0 }
 0x1cf   :  { %v1384_v62 = vsub.f32 %v1167_v29, %v392_v7  ;;  %v1387_v10 = vsub.f32 %v1170_v32, %v392_v7  ;;  %v634_v7 = vld [vmem:[%s1691_s5 + $0x180] sm:$0xff] }
 0x1d0   :  { %v366_v12 = vpop.xlane.xlu0 %365 }
 0x1d1   :  { %v393_v17 = vmul.f32 0.00390625, %v366_v12  ;;  %v422_v14 = vmul.f32 %v1384_v62, %v1384_v62  ;;  %v423_v18 = vmul.f32 %v1387_v10, %v1387_v10  ;;  %v636_v12 = vld [vmem:[%s1691_s5 + $0x190] sm:$0xff] }
 0x1d3   :  { %v1394_v19 = vsub.f32 %v1178_v44, %v393_v17  ;;  %v1397_v9 = vsub.f32 %v1181_v47, %v393_v17  ;;  %v442_v13 = vadd.f32 %v423_v18, %v422_v14  ;;  %v926_v14 = vpack.c.bf16 %v636_v12, %v634_v7 }
 0x1d4   :  { %v369_v29 = vpop.xlane.xlu1 %368 }
 0x1d5   :  { %v394_v22 = vmul.f32 0.00390625, %v369_v29  ;;  %443 = vadd.xlane.f32.xlu0 %v442_v13  ;;  %v424_v32 = vmul.f32 %v1394_v19, %v1394_v19  ;;  %v425_v23 = vmul.f32 %v1397_v9, %v1397_v9  ;;  %v639_v13 = vld [vmem:[%s1691_s5 + $0x1a8] sm:$0xff]  ;;  %v641_v29 = vld [vmem:[%s1691_s5 + $0x1b8] sm:$0xff] }
 0x1d7   :  { %v1404_v26 = vsub.f32 %v1191_v63, %v394_v22  ;;  %v1407_v27 = vsub.f32 %v1194_v2, %v394_v22  ;;  %v445_v44 = vadd.f32 %v425_v23, %v424_v32 }
 0x1d8   :  { %v372_v30 = vpop.xlane.xlu1 %371 }
 0x1d9   :  { %v395_v47 = vmul.f32 0.00390625, %v372_v30  ;;  %446 = vadd.xlane.f32.xlu1 %v445_v44  ;;  %v426_v24 = vmul.f32 %v1404_v26, %v1404_v26  ;;  %v427_v35 = vmul.f32 %v1407_v27, %v1407_v27  ;;  %v928_v44 = vpack.c.bf16 %v641_v29, %v639_v13  ;;  %v638_v30 = vld [vmem:[%s1691_s5 + $0x1a0] sm:$0xff] }
 0x1db   :  { %v1414_v28 = vsub.f32 %v1201_v15, %v395_v47  ;;  %v1417_v36 = vsub.f32 %v1203_v16, %v395_v47  ;;  %v448_v63 = vadd.f32 %v427_v35, %v426_v24  ;;  %v640_v47 = vld [vmem:[%s1691_s5 + $0x1b0] sm:$0xff] }
 0x1dc   :  { %v375_v37 = vpop.xlane.xlu0 %374  ;;  %v930_v35 = vpack.c.bf16 %v640_v47, %v638_v30 }
 0x1dd   :  { %v396_v2 = vmul.f32 0.00390625, %v375_v37  ;;  %449 = vadd.xlane.f32.xlu0 %v448_v63  ;;  %v428_v38 = vmul.f32 %v1414_v28, %v1414_v28  ;;  %v429_v40 = vmul.f32 %v1417_v36, %v1417_v36  ;;  %v643_v37 = vld [vmem:[%s1691_s5 + $0x1c8] sm:$0xff] }
 0x1df   :  { %v1424_v41 = vsub.f32 %v1210_v33, %v396_v2  ;;  %v1427_v42 = vsub.f32 %v1212_v25, %v396_v2  ;;  %v451_v15 = vadd.f32 %v429_v40, %v428_v38  ;;  %v633_v33 = vld [vmem:[%s1691_s5 + $0x178] sm:$0xff] }
 0x1e0   :  { %v378_v45 = vpop.xlane.xlu1 %377  ;;  %v920_v43 = vpack.c.bf16 %v633_v33, %v631_v49  ;;  %v645_v2 = vld [vmem:[%s1691_s5 + $0x1d8] sm:$0xff] }
 0x1e1   :  { %v397_v16 = vmul.f32 0.00390625, %v378_v45  ;;  %452 = vadd.xlane.f32.xlu1 %v451_v15  ;;  %v430_v46 = vmul.f32 %v1424_v41, %v1424_v41  ;;  %v431_v48 = vmul.f32 %v1427_v42, %v1427_v42  ;;  %v932_v45 = vpack.c.bf16 %v645_v2, %v643_v37 }
 0x1e2   :  { %921 = vmatprep.subr.bf16.mxu1 %v920_v43  ;;  %v649_v43 = vld [vmem:[%s1691_s5 + $0x1f8] sm:$0xff] }
 0x1e3   :  { %v1440_v25 = vsub.f32 %v1219_v50, %v397_v16  ;;  %v1443_v51 = vsub.f32 %v1221_v39, %v397_v16  ;;  %v454_v52 = vadd.f32 %v431_v48, %v430_v46  ;;  %923 = vmatpush1.bf16.msra.mxu1 %v922_v60  ;;  %v642_v16 = vld [vmem:[%s1691_s5 + $0x1c0] sm:$0xff]  ;;  %v644_v46 = vld [vmem:[%s1691_s5 + $0x1d0] sm:$0xff] }
 0x1e4   :  { %v381_v57 = vpop.xlane.xlu0 %380  ;;  %925 = vmatprep.subr.bf16.mxu1 %v924_v55  ;;  %v934_v49 = vpack.c.bf16 %v644_v46, %v642_v16 }
 0x1e5   :  { %v398_v61 = vmul.f32 0.00390625, %v381_v57  ;;  %455 = vadd.xlane.f32.xlu0 %v454_v52  ;;  %v432_v50 = vmul.f32 %v1440_v25, %v1440_v25  ;;  %v433_v39 = vmul.f32 %v1443_v51, %v1443_v51  ;;  %v647_v52 = vld [vmem:[%s1691_s5 + $0x1e8] sm:$0xff] }
 0x1e6   :  { %v936_v60 = vpack.c.bf16 %v649_v43, %v647_v52 }
 0x1e7   :  { %v1462_v4 = vsub.f32 %v1227_v58, %v398_v61  ;;  %v1465_v5 = vsub.f32 %v1229_v3, %v398_v61  ;;  %v457_v6 = vadd.f32 %v433_v39, %v432_v50  ;;  %927 = vmatpush1.bf16.msra.mxu1 %v926_v14  ;;  %v646_v61 = vld [vmem:[%s1691_s5 + $0x1e0] sm:$0xff]  ;;  %v648_v50 = vld [vmem:[%s1691_s5 + $0x1f0] sm:$0xff] }
 0x1e8   :  { %v384_v17 = vpop.xlane.xlu1 %383  ;;  %929 = vmatprep.subr.bf16.mxu1 %v928_v44  ;;  %v938_v39 = vpack.c.bf16 %v648_v50, %v646_v61 }
 0x1e9   :  { %v399_v18 = vmul.f32 0.00390625, %v384_v17  ;;  %458 = vadd.xlane.f32.xlu1 %v457_v6  ;;  %v434_v58 = vmul.f32 %v1462_v4, %v1462_v4  ;;  %v435_v3 = vmul.f32 %v1465_v5, %v1465_v5 }
 0x1eb   :  { %v1484_v22 = vsub.f32 %v1233_v8, %v399_v18  ;;  %v1487_v32 = vsub.f32 %v1235_v11, %v399_v18  ;;  %v460_v23 = vadd.f32 %v435_v3, %v434_v58  ;;  %931 = vmatpush1.bf16.msra.mxu1 %v930_v35  ;;  %v522_v3 = vld [vmem:[%s1689_s3] sm:$0x3] }
 0x1ec   :  { %v387_v24 = vpop.xlane.xlu0 %386  ;;  %933 = vmatprep.subr.bf16.mxu1 %v932_v45  ;;  %v1550_v44 = vrot.slane %v522_v3, %v1142_v54  ;;  %v1553_v30 = vrot.slane %v522_v3, %v1147_v56 }
 0x1ed   :  { %v400_v63 = vmul.f32 0.00390625, %v387_v24  ;;  %461 = vadd.xlane.f32.xlu0 %v460_v23  ;;  %v436_v8 = vmul.f32 %v1484_v22, %v1484_v22  ;;  %v437_v11 = vmul.f32 %v1487_v32, %v1487_v32  ;;  %v554_v23 = vld [vmem:[%s1690_s4] sm:$0x3] }
 0x1ef   :  { %v1506_v38 = vsub.f32 %v1239_v20, %v400_v63  ;;  %v1509_v40 = vsub.f32 %v1241_v21, %v400_v63  ;;  %v463_v15 = vadd.f32 %v437_v11, %v436_v8  ;;  %935 = vmatpush1.bf16.msra.mxu1 %v934_v49  ;;  %v1557_v8 = vrot.slane %v554_v23, %v1142_v54 }
 0x1f0   :  { %v390_v48 = vpop.xlane.xlu1 %389  ;;  %937 = vmatprep.subr.bf16.mxu1 %v936_v60  ;;  %v1560_v11 = vrot.slane %v554_v23, %v1147_v56 }
 0x1f1   :  { %v401_v33 = vmul.f32 0.00390625, %v390_v48  ;;  %464 = vadd.xlane.f32.xlu1 %v463_v15  ;;  %v438_v20 = vmul.f32 %v1506_v38, %v1506_v38  ;;  %v439_v21 = vmul.f32 %v1509_v40, %v1509_v40 }
 0x1f3   :  { %v1528_v53 = vsub.f32 %v1245_v34, %v401_v33  ;;  %v1531_v59 = vsub.f32 %v1247_v31, %v401_v33  ;;  %v466_v57 = vadd.f32 %v439_v21, %v438_v20  ;;  %939 = vmatpush1.bf16.msra.mxu1 %v938_v39 }
 0x1f5   :  { %467 = vadd.xlane.f32.xlu0 %v466_v57  ;;  %v440_v0 = vmul.f32 %v1528_v53, %v1528_v53  ;;  %v441_v34 = vmul.f32 %v1531_v59, %v1531_v59 }
 0x1f7   :  { %v469_v31 = vadd.f32 %v441_v34, %v440_v0 }
 0x1f9   :  { %470 = vadd.xlane.f32.xlu1 %v469_v31 }
 0x262   :  { %v444_v1 = vpop.xlane.xlu0 %443 }
 0x263   :  { %v472_v6 = vmul.f32 0.00390625, %v444_v1 }
 0x265   :  { %v482_v55 = vadd.f32 1e-12, %v472_v6 }
 0x266   :  { %v447_v7 = vpop.xlane.xlu1 %446 }
 0x267   :  { %983 = vrsqrt.f32 %v482_v55  ;;  %v473_v12 = vmul.f32 0.00390625, %v447_v7 }
 0x269   :  { %v483_v17 = vadd.f32 1e-12, %v473_v12 }
 0x26a   :  { %v450_v14 = vpop.xlane.xlu0 %449 }
 0x26b   :  { %985 = vrsqrt.f32 %v483_v17  ;;  %v474_v18 = vmul.f32 0.00390625, %v450_v14 }
 0x26d   :  { %v484_v58 = vadd.f32 1e-12, %v474_v18 }
 0x26e   :  { %v453_v13 = vpop.xlane.xlu1 %452 }
 0x26f   :  { %987 = vrsqrt.f32 %v484_v58  ;;  %v475_v29 = vmul.f32 0.00390625, %v453_v13 }
 0x271   :  { %v984_v47 = vpop.eup %983  ;;  %v485_v24 = vadd.f32 1e-12, %v475_v29 }
 0x272   :  { %v456_v35 = vpop.xlane.xlu0 %455  ;;  %v503_v63 = vmul.f32 %v984_v47, %v1387_v10  ;;  %v502_v37 = vmul.f32 %v984_v47, %v1384_v62 }
 0x273   :  { %989 = vrsqrt.f32 %v485_v24  ;;  %v476_v2 = vmul.f32 0.00390625, %v456_v35 }
 0x274   :  { %v535_v15 = vmul.f32 %v1553_v30, %v503_v63  ;;  %v534_v45 = vmul.f32 %v1550_v44, %v502_v37 }
 0x275   :  { %v986_v16 = vpop.eup %985  ;;  %v486_v46 = vadd.f32 1e-12, %v476_v2 }
 0x276   :  { %v459_v48 = vpop.xlane.xlu1 %458  ;;  %v567_v49 = vadd.f32 %v1560_v11, %v535_v15  ;;  %v566_v10 = vadd.f32 %v1557_v8, %v534_v45  ;;  %v505_v33 = vmul.f32 %v986_v16, %v1397_v9  ;;  %v504_v20 = vmul.f32 %v986_v16, %v1394_v19 }
 0x277   :  { %991 = vrsqrt.f32 %v486_v46  ;;  %v477_v21 = vmul.f32 0.00390625, %v459_v48 }
 0x278   :  { %726 = vmatprep.mubr.f32.mxu1 %v567_v49  ;;  %v537_v62 = vmul.f32 %v1553_v30, %v505_v33  ;;  %v536_v52 = vmul.f32 %v1550_v44, %v504_v20 }
 0x279   :  { %v988_v43 = vpop.eup %987  ;;  %v487_v57 = vadd.f32 1e-12, %v477_v21  ;;  %727 = vmatmul.mubr.f32.vlgmr.msra.gmra.mrb[0].mxu1 %v566_v10 }
 0x27a   :  { %v462_v60 = vpop.xlane.xlu0 %461  ;;  %v569_v61 = vadd.f32 %v1560_v11, %v537_v62  ;;  %v568_v50 = vadd.f32 %v1557_v8, %v536_v52  ;;  %v507_v39 = vmul.f32 %v988_v43, %v1407_v27  ;;  %v506_v9 = vmul.f32 %v988_v43, %v1404_v26 }
 0x27b   :  { %993 = vrsqrt.f32 %v487_v57  ;;  %v478_v19 = vmul.f32 0.00390625, %v462_v60 }
 0x27c   :  { %732 = vmatprep.mubr.f32.mxu1 %v569_v61  ;;  %v539_v0 = vmul.f32 %v1553_v30, %v507_v39  ;;  %v538_v34 = vmul.f32 %v1550_v44, %v506_v9 }
 0x27d   :  { %v990_v31 = vpop.eup %989  ;;  %v488_v1 = vadd.f32 1e-12, %v478_v19  ;;  %733 = vmatmul.mubr.f32.gmra.mrb[2].mxu1 %v568_v50 }
 0x27e   :  { %v465_v6 = vpop.xlane.xlu1 %464  ;;  %v571_v55 = vadd.f32 %v1560_v11, %v539_v0  ;;  %v570_v7 = vadd.f32 %v1557_v8, %v538_v34  ;;  %v509_v12 = vmul.f32 %v990_v31, %v1417_v36  ;;  %v508_v27 = vmul.f32 %v990_v31, %v1414_v28 }
 0x27f   :  { %995 = vrsqrt.f32 %v488_v1  ;;  %v479_v26 = vmul.f32 0.00390625, %v465_v6 }
 0x280   :  { %738 = vmatprep.mubr.f32.mxu1 %v571_v55  ;;  %v541_v17 = vmul.f32 %v1553_v30, %v509_v12  ;;  %v540_v14 = vmul.f32 %v1550_v44, %v508_v27  ;;  %v650_v12 = vld [vmem:[%s1692_s6] sm:$0x3] }
 0x281   :  { %v992_v18 = vpop.eup %991  ;;  %v489_v58 = vadd.f32 1e-12, %v479_v26  ;;  %739 = vmatmul.mubr.f32.gmra.mrb[4].mxu1 %v570_v7 }
 0x282   :  { %v468_v3 = vpop.xlane.xlu0 %467  ;;  %v573_v13 = vadd.f32 %v1560_v11, %v541_v17  ;;  %v572_v29 = vadd.f32 %v1557_v8, %v540_v14  ;;  %v511_v23 = vmul.f32 %v992_v18, %v1427_v42  ;;  %v510_v36 = vmul.f32 %v992_v18, %v1424_v41 }
 0x283   :  { %997 = vrsqrt.f32 %v489_v58  ;;  %v480_v28 = vmul.f32 0.00390625, %v468_v3 }
 0x284   :  { %744 = vmatprep.mubr.f32.mxu1 %v573_v13  ;;  %v543_v47 = vmul.f32 %v1553_v30, %v511_v23  ;;  %v542_v24 = vmul.f32 %v1550_v44, %v510_v36 }
 0x285   :  { %v994_v35 = vpop.eup %993  ;;  %v490_v63 = vadd.f32 1e-12, %v480_v28  ;;  %745 = vmatmul.mubr.f32.gmra.mrb[6].mxu1 %v572_v29 }
 0x286   :  { %v471_v37 = vpop.xlane.xlu1 %470  ;;  %v575_v2 = vadd.f32 %v1560_v11, %v543_v47  ;;  %v574_v15 = vadd.f32 %v1557_v8, %v542_v24  ;;  %v513_v45 = vmul.f32 %v994_v35, %v1443_v51  ;;  %v512_v42 = vmul.f32 %v994_v35, %v1440_v25 }
 0x287   :  { %999 = vrsqrt.f32 %v490_v63  ;;  %v481_v41 = vmul.f32 0.00390625, %v471_v37 }
 0x288   :  { %750 = vmatprep.mubr.f32.mxu1 %v575_v2  ;;  %v545_v16 = vmul.f32 %v1553_v30, %v513_v45  ;;  %v544_v46 = vmul.f32 %v1550_v44, %v512_v42 }
 0x289   :  { %v996_v48 = vpop.eup %995  ;;  %v491_v49 = vadd.f32 1e-12, %v481_v41  ;;  %751 = vmatmul.mubr.f32.gmra.mrb[8].mxu1 %v574_v15 }
 0x28a   :  { %v577_v10 = vadd.f32 %v1560_v11, %v545_v16  ;;  %v576_v33 = vadd.f32 %v1557_v8, %v544_v46  ;;  %v515_v20 = vmul.f32 %v996_v48, %v1465_v5  ;;  %v514_v51 = vmul.f32 %v996_v48, %v1462_v4 }
 0x28b   :  { %1001 = vrsqrt.f32 %v491_v49 }
 0x28c   :  { %756 = vmatprep.mubr.f32.mxu1 %v577_v10  ;;  %v547_v25 = vmul.f32 %v1553_v30, %v515_v20  ;;  %v546_v21 = vmul.f32 %v1550_v44, %v514_v51 }
 0x28d   :  { %v998_v62 = vpop.eup %997  ;;  %757 = vmatmul.mubr.f32.gmra.mrb[10].mxu1 %v576_v33 }
 0x28e   :  { %v579_v52 = vadd.f32 %v1560_v11, %v547_v25  ;;  %v578_v43 = vadd.f32 %v1557_v8, %v546_v21  ;;  %v517_v57 = vmul.f32 %v998_v62, %v1487_v32  ;;  %v516_v60 = vmul.f32 %v998_v62, %v1484_v22 }
 0x290   :  { %762 = vmatprep.mubr.f32.mxu1 %v579_v52  ;;  %v549_v5 = vmul.f32 %v1553_v30, %v517_v57  ;;  %v548_v4 = vmul.f32 %v1550_v44, %v516_v60 }
 0x291   :  { %v1000_v61 = vpop.eup %999  ;;  %763 = vmatmul.mubr.f32.gmra.mrb[12].mxu1 %v578_v43 }
 0x292   :  { %v581_v50 = vadd.f32 %v1560_v11, %v549_v5  ;;  %v580_v39 = vadd.f32 %v1557_v8, %v548_v4  ;;  %v519_v9 = vmul.f32 %v1000_v61, %v1509_v40  ;;  %v518_v19 = vmul.f32 %v1000_v61, %v1506_v38 }
 0x294   :  { %768 = vmatprep.mubr.f32.mxu1 %v581_v50  ;;  %v551_v32 = vmul.f32 %v1553_v30, %v519_v9  ;;  %v550_v22 = vmul.f32 %v1550_v44, %v518_v19 }
 0x295   :  { %v1002_v0 = vpop.eup %1001  ;;  %769 = vmatmul.mubr.f32.gmra.mrb[14].mxu1 %v580_v39 }
 0x296   :  { %v583_v34 = vadd.f32 %v1560_v11, %v551_v32  ;;  %v582_v31 = vadd.f32 %v1557_v8, %v550_v22  ;;  %v521_v1 = vmul.f32 %v1002_v0, %v1531_v59  ;;  %v520_v6 = vmul.f32 %v1002_v0, %v1528_v53 }
 0x297   :  { %v655_v59 = vrot.slane %v650_v12, %v1142_v54  ;;  %v659_v53 = vrot.slane %v650_v12, %v1147_v56 }
 0x298   :  { %774 = vmatprep.mubr.f32.mxu1 %v583_v34  ;;  %v553_v40 = vmul.f32 %v1553_v30, %v521_v1  ;;  %v552_v38 = vmul.f32 %v1550_v44, %v520_v6 }
 0x299   :  { %775 = vmatmul.mubr.f32.gmra.mrb[16].mxu1 %v582_v31 }
 0x29a   :  { %v585_v55 = vadd.f32 %v1560_v11, %v553_v40  ;;  %v584_v7 = vadd.f32 %v1557_v8, %v552_v38 }
 0x29c   :  { %780 = vmatprep.mubr.f32.mxu1 %v585_v55 }
 0x29d   :  { %781 = vmatmul.mubr.f32.gmra.mrb[18].mxu1 %v584_v7 }
 0x34c   :  { %v728_v27 = vpop.f32.mrb[0].mxu1 }
 0x34d   :  { %v729_v26 = vadd.f32 %v728_v27, %v655_v59  ;;  %v730_v30 = vpop.f32.mrb[1].mxu1 }
 0x34e   :  { %v731_v17 = vadd.f32 %v730_v30, %v659_v53 }
 0x34f   :  { %787 = vst [vmem:[%s1693_s7] sm:$0xff] %v729_v26 }
 0x350   :  { %788 = vst [vmem:[%s1693_s7 + $0x8] sm:$0xff] %v731_v17  ;;  %v734_v44 = vpop.f32.mrb[2].mxu1 }
 0x351   :  { %v735_v8 = vadd.f32 %v734_v44, %v655_v59  ;;  %v736_v11 = vpop.f32.mrb[3].mxu1 }
 0x352   :  { %v737_v14 = vadd.f32 %v736_v11, %v659_v53 }
 0x353   :  { %789 = vst [vmem:[%s1693_s7 + $0x10] sm:$0xff] %v735_v8 }
 0x354   :  { %790 = vst [vmem:[%s1693_s7 + $0x18] sm:$0xff] %v737_v14  ;;  %v740_v54 = vpop.f32.mrb[4].mxu1 }
 0x355   :  { %v741_v56 = vadd.f32 %v740_v54, %v655_v59  ;;  %v742_v18 = vpop.f32.mrb[5].mxu1 }
 0x356   :  { %v743_v58 = vadd.f32 %v742_v18, %v659_v53 }
 0x357   :  { %791 = vst [vmem:[%s1693_s7 + $0x20] sm:$0xff] %v741_v56 }
 0x358   :  { %792 = vst [vmem:[%s1693_s7 + $0x28] sm:$0xff] %v743_v58  ;;  %v746_v3 = vpop.f32.mrb[6].mxu1 }
 0x359   :  { %v747_v13 = vadd.f32 %v746_v3, %v655_v59  ;;  %v748_v29 = vpop.f32.mrb[7].mxu1 }
 0x35a   :  { %v749_v23 = vadd.f32 %v748_v29, %v659_v53 }
 0x35b   :  { %793 = vst [vmem:[%s1693_s7 + $0x30] sm:$0xff] %v747_v13 }
 0x35c   :  { %794 = vst [vmem:[%s1693_s7 + $0x38] sm:$0xff] %v749_v23  ;;  %v752_v36 = vpop.f32.mrb[8].mxu1 }
 0x35d   :  { %v753_v28 = vadd.f32 %v752_v36, %v655_v59  ;;  %v754_v47 = vpop.f32.mrb[9].mxu1 }
 0x35e   :  { %v755_v24 = vadd.f32 %v754_v47, %v659_v53 }
 0x35f   :  { %795 = vst [vmem:[%s1693_s7 + $0x40] sm:$0xff] %v753_v28 }
 0x360   :  { %796 = vst [vmem:[%s1693_s7 + $0x48] sm:$0xff] %v755_v24  ;;  %v758_v35 = vpop.f32.mrb[10].mxu1 }
 0x361   :  { %v759_v63 = vadd.f32 %v758_v35, %v655_v59  ;;  %v760_v37 = vpop.f32.mrb[11].mxu1 }
 0x362   :  { %v761_v2 = vadd.f32 %v760_v37, %v659_v53 }
 0x363   :  { %797 = vst [vmem:[%s1693_s7 + $0x50] sm:$0xff] %v759_v63 }
 0x364   :  { %798 = vst [vmem:[%s1693_s7 + $0x58] sm:$0xff] %v761_v2  ;;  %v764_v15 = vpop.f32.mrb[12].mxu1 }
 0x365   :  { %v765_v45 = vadd.f32 %v764_v15, %v655_v59  ;;  %v766_v42 = vpop.f32.mrb[13].mxu1 }
 0x366   :  { %v767_v41 = vadd.f32 %v766_v42, %v659_v53 }
 0x367   :  { %799 = vst [vmem:[%s1693_s7 + $0x60] sm:$0xff] %v765_v45 }
 0x368   :  { %800 = vst [vmem:[%s1693_s7 + $0x68] sm:$0xff] %v767_v41  ;;  %v770_v16 = vpop.f32.mrb[14].mxu1 }
 0x369   :  { %v771_v46 = vadd.f32 %v770_v16, %v655_v59  ;;  %v772_v48 = vpop.f32.mrb[15].mxu1 }
 0x36a   :  { %v773_v49 = vadd.f32 %v772_v48, %v659_v53 }
 0x36b   :  { %801 = vst [vmem:[%s1693_s7 + $0x70] sm:$0xff] %v771_v46 }
 0x36c   :  { %802 = vst [vmem:[%s1693_s7 + $0x78] sm:$0xff] %v773_v49  ;;  %v776_v10 = vpop.f32.mrb[16].mxu1 }
 0x36d   :  { %v777_v33 = vadd.f32 %v776_v10, %v655_v59  ;;  %v778_v20 = vpop.f32.mrb[17].mxu1 }
 0x36e   :  { %v779_v51 = vadd.f32 %v778_v20, %v659_v53 }
 0x36f   :  { %803 = vst [vmem:[%s1693_s7 + $0x80] sm:$0xff] %v777_v33 }
 0x370   :  { %804 = vst [vmem:[%s1693_s7 + $0x88] sm:$0xff] %v779_v51  ;;  %v782_v25 = vpop.f32.mrb[18].mxu1 }
 0x371   :  { %v783_v21 = vadd.f32 %v782_v25, %v655_v59  ;;  %v784_v62 = vpop.f32.mrb[19].mxu1 }
 0x372   :  { %v785_v52 = vadd.f32 %v784_v62, %v659_v53 }
 0x373   :  { %805 = vst [vmem:[%s1693_s7 + $0x90] sm:$0xff] %v783_v21 }
 0x374   :  { %806 = vst [vmem:[%s1693_s7 + $0x98] sm:$0xff] %v785_v52 }
 0x375   :  { %811 = vsyncpa [#allocation3], 1 }

</bundles_post_ra>
